<compile_context>
chip_gen: v5e
topology: v5e:2x2
jax: 0.10.0
libtpu: 0.0.40
codegen_flags: <defaults>
</compile_context>

<pallas_src>
import jax
import jax.numpy as jnp
from jax.experimental import pallas as pl
from jax.experimental.pallas import tpu as pltpu


# Packed lane-dense slab layout: x1 | x2 | x3 | x4 | x5 | pad
#                                128 | 64 | 32 | 16 |  2 | 14   -> 256 lanes
_SLAB_W = 256
_OFF_X1, _OFF_X2, _OFF_X3, _OFF_X4, _OFF_X5 = 0, 128, 192, 224, 240


def _mlp_kernel(x_ref,
                w1_ref, b1_ref, w2_ref, b2_ref,
                w3a_ref, b3a_ref, w3b_ref, b3b_ref,
                w4_ref, b4_ref, w5_ref, b5_ref,
                slab_ref):
    # MXU operand dtype (bf16 by default); accumulation is always f32,
    # bias-add / ReLU stay f32 on the VPU (v5e-friendly).
    cd = w1_ref.dtype
    x = x_ref[...]

    # fc1 — stream result out immediately (128-lane aligned => unmasked store)
    x1 = jnp.dot(x.astype(cd), w1_ref[...],
                 preferred_element_type=jnp.float32) + b1_ref[...]
    slab_ref[:, _OFF_X1:_OFF_X1 + 128] = x1
    h = jnp.maximum(x1, 0.0)

    # fc2
    x2 = jnp.dot(h.astype(cd), w2_ref[...],
                 preferred_element_type=jnp.float32) + b2_ref[...]
    slab_ref[:, _OFF_X2:_OFF_X2 + 64] = x2
    h = jnp.maximum(x2, 0.0)

    # fc3 = Linear(64,32) -> ReLU -> Linear(32,32)
    h3 = jnp.dot(h.astype(cd), w3a_ref[...],
                 preferred_element_type=jnp.float32) + b3a_ref[...]
    h3 = jnp.maximum(h3, 0.0)
    x3 = jnp.dot(h3.astype(cd), w3b_ref[...],
                 preferred_element_type=jnp.float32) + b3b_ref[...]
    slab_ref[:, _OFF_X3:_OFF_X3 + 32] = x3
    h = jnp.maximum(x3, 0.0)   # reference applies relu1 to x3

    # fc4
    x4 = jnp.dot(h.astype(cd), w4_ref[...],
                 preferred_element_type=jnp.float32) + b4_ref[...]
    slab_ref[:, _OFF_X4:_OFF_X4 + 16] = x4
    x4r = jnp.maximum(x4, 0.0)

    # fc5 (relu5 is computed in torch but its output is not returned)
    x5 = jnp.dot(x4r.astype(cd), w5_ref[...],
                 preferred_element_type=jnp.float32) + b5_ref[...]
    slab_ref[:, _OFF_X5:_OFF_X5 + 2] = x5
    # lanes 242:256 are padding and intentionally left unwritten (sliced off).


def _round_up(n, m):
    return (n + m - 1) // m * m


def _buffered_param_kw():
    """kw for single-buffering constant-index parameter blocks (if supported)."""
    if hasattr(pl, "Buffered"):
        try:
            pl.BlockSpec((8, 128), lambda i: (0, 0), pipeline_mode=pl.Buffered(1))
            return {"pipeline_mode": pl.Buffered(1)}
        except TypeError:
            pass
    return {}


def test_dnn_forward(x, params, *, batch_tile=1024, operand_dtype=jnp.bfloat16):
    """Whole TestDNN forward in one Pallas kernel, tiled over batch.

    Returns (x1, x2, x3, x4, x5, x4_relu), matching the PyTorch forward.
    bf16 MXU operands (f32 accumulation) are the default on all generations;
    pass operand_dtype=jnp.float32 for bit-strict matmuls.
    """
    B = x.shape[0]
    # Batch tile: multiple of 8 (sublane), capped so the grid has >= 2 steps
    # whenever possible (pipelining + both v7x TensorCores), never > padded B.
    bt = min(batch_tile, _round_up(max(pl.cdiv(B, 2), 8), 8))
    Bp = _round_up(B, bt)
    if Bp != B:
        x = jnp.pad(x, ((0, Bp - B), (0, 0)))

    (w1, b1, w2, b2, w3a, b3a, w3b, b3b, w4, b4, w5, b5) = params
    # Cast weights once for the MXU; biases stay f32 (added post-accumulation).
    w1, w2, w3a, w3b, w4, w5 = (w.astype(operand_dtype)
                                for w in (w1, w2, w3a, w3b, w4, w5))
    b1, b2, b3a, b3b, b4, b5 = (b.astype(jnp.float32)
                                for b in (b1, b2, b3a, b3b, b4, b5))
    # NOTE: x is fed at its incoming dtype (no standalone wrapper cast — that
    # would just move HBM traffic into a separate XLA convert op). If the
    # producer can hand over bf16 x, the in-kernel astype becomes a no-op.

    grid = (Bp // bt,)

    def build(param_kw):
        def row_spec(n):
            # activation / output tiles: (bt, n) sliding over batch
            return pl.BlockSpec((bt, n), lambda i: (i, 0))

        def full_spec(shape):
            # parameters: whole array resident in VMEM, constant block index
            # (Pallas skips re-DMA when the block index does not change);
            # single-buffered when the API allows it.
            return pl.BlockSpec(shape, lambda i: (0, 0), **param_kw)

        in_specs = [
            row_spec(256),
            full_spec(w1.shape), full_spec(b1.shape),
            full_spec(w2.shape), full_spec(b2.shape),
            full_spec(w3a.shape), full_spec(b3a.shape),
            full_spec(w3b.shape), full_spec(b3b.shape),
            full_spec(w4.shape), full_spec(b4.shape),
            full_spec(w5.shape), full_spec(b5.shape),
        ]
        return pl.pallas_call(
            _mlp_kernel,
            out_shape=jax.ShapeDtypeStruct((Bp, _SLAB_W), jnp.float32),
            grid_spec=pltpu.PrefetchScalarGridSpec(
                num_scalar_prefetch=0,
                grid=grid,
                in_specs=in_specs,
                out_specs=row_spec(_SLAB_W),
            ),
            compiler_params=pltpu.CompilerParams(
                dimension_semantics=("parallel",),
                vmem_limit_bytes=32 * 1024 * 1024),
        )

    args = (x, w1, b1, w2, b2, w3a, b3a, w3b, b3b, w4, b4, w5, b5)
    param_kw = _buffered_param_kw()
    try:
        slab = build(param_kw)(*args)
    except Exception:
        if not param_kw:
            raise
        # Fall back to default double-buffered parameter blocks.
        slab = build({})(*args)

    x1 = slab[:B, _OFF_X1:_OFF_X1 + 128]
    x2 = slab[:B, _OFF_X2:_OFF_X2 + 64]
    x3 = slab[:B, _OFF_X3:_OFF_X3 + 32]
    x4 = slab[:B, _OFF_X4:_OFF_X4 + 16]
    x5 = slab[:B, _OFF_X5:_OFF_X5 + 2]
    x4r = jnp.maximum(x4, 0.0)   # recomputed from f32 x4 — bit-identical, fuses in XLA
    return (x1, x2, x3, x4, x5, x4r)


def init_params(key):
    """Deterministic parameter init (PyTorch-Linear-style uniform fan-in)."""
    dims = [(256, 128), (128, 64), (64, 32), (32, 32), (32, 16), (16, 2)]
    params = []
    for (fan_in, fan_out) in dims:
        key, kw, kb = jax.random.split(key, 3)
        bound = 1.0 / (fan_in ** 0.5)
        # stored as (in, out) — equivalent to PyTorch weight.T
        w = jax.random.uniform(kw, (fan_in, fan_out), jnp.float32, -bound, bound)
        b = jax.random.uniform(kb, (1, fan_out), jnp.float32, -bound, bound)
        params += [w, b]
    return tuple(params)


def reference_forward(x, params):
    (w1, b1, w2, b2, w3a, b3a, w3b, b3b, w4, b4, w5, b5) = params
    x1 = x @ w1 + b1
    x2 = jnp.maximum(x1, 0) @ w2 + b2
    h3 = jnp.maximum(jnp.maximum(x2, 0) @ w3a + b3a, 0)
    x3 = h3 @ w3b + b3b
    x4 = jnp.maximum(x3, 0) @ w4 + b4
    x4r = jnp.maximum(x4, 0)
    x5 = x4r @ w5 + b5
    return (x1, x2, x3, x4, x5, x4r)


if __name__ == "__main__":
    key = jax.random.PRNGKey(0)
    kx, kp = jax.random.split(key)
    B = 16                        # small batch; bt=8 -> grid of 2 (pipelined)
    x = jax.random.normal(kx, (B, 256), jnp.float32)
    params = init_params(kp)
    refs = reference_forward(x, params)

    # f32 MXU operands: strict structural/numerical check.
    outs_f32 = jax.block_until_ready(
        test_dnn_forward(x, params, operand_dtype=jnp.float32))
    for o, r in zip(outs_f32, refs):
        assert o.shape == r.shape and o.dtype == r.dtype
        assert jnp.max(jnp.abs(o - r)) < 1e-4

    # Default path: bf16 MXU operands, f32 accumulation (fast on v5e/v6e/v7x).
    outs = jax.block_until_ready(test_dnn_forward(x, params))
    for o, r in zip(outs, refs):
        assert o.shape == r.shape and o.dtype == r.dtype
        scale = jnp.maximum(jnp.max(jnp.abs(r)), 1.0)
        assert jnp.max(jnp.abs(o - r)) / scale < 5e-2

    print("KERNEL_OK")
</pallas_src>

<mosaic_0001>
module attributes {stable_mosaic.version = 11 : i64} {
  func.func @_mlp_kernel(%arg0: i32, %arg1: memref<8x256xf32, #tpu.memory_space<vmem>>, %arg2: memref<256x128xf32, #tpu.memory_space<vmem>>, %arg3: memref<1x128xf32, #tpu.memory_space<vmem>>, %arg4: memref<128x64xf32, #tpu.memory_space<vmem>>, %arg5: memref<1x64xf32, #tpu.memory_space<vmem>>, %arg6: memref<64x32xf32, #tpu.memory_space<vmem>>, %arg7: memref<1x32xf32, #tpu.memory_space<vmem>>, %arg8: memref<32x32xf32, #tpu.memory_space<vmem>>, %arg9: memref<1x32xf32, #tpu.memory_space<vmem>>, %arg10: memref<32x16xf32, #tpu.memory_space<vmem>>, %arg11: memref<1x16xf32, #tpu.memory_space<vmem>>, %arg12: memref<16x2xf32, #tpu.memory_space<vmem>>, %arg13: memref<1x2xf32, #tpu.memory_space<vmem>>, %arg14: memref<8x256xf32, #tpu.memory_space<vmem>>) attributes {dimension_semantics = [#tpu.dimension_semantics<parallel>], iteration_bounds = array<i64: 2>, scalar_prefetch = 0 : i64, scratch_operands = 0 : i64, tpu.core_type = #tpu.core_type<tc>, window_params = [{transform_indices = @transform_0, window_bounds = array<i64: 8, 256>}, {pipeline_mode = #tpu.pipeline_mode<synchronous>, transform_indices = @transform_1, window_bounds = array<i64: 256, 128>}, {pipeline_mode = #tpu.pipeline_mode<synchronous>, transform_indices = @transform_2, window_bounds = array<i64: 1, 128>}, {pipeline_mode = #tpu.pipeline_mode<synchronous>, transform_indices = @transform_3, window_bounds = array<i64: 128, 64>}, {pipeline_mode = #tpu.pipeline_mode<synchronous>, transform_indices = @transform_4, window_bounds = array<i64: 1, 64>}, {pipeline_mode = #tpu.pipeline_mode<synchronous>, transform_indices = @transform_5, window_bounds = array<i64: 64, 32>}, {pipeline_mode = #tpu.pipeline_mode<synchronous>, transform_indices = @transform_6, window_bounds = array<i64: 1, 32>}, {pipeline_mode = #tpu.pipeline_mode<synchronous>, transform_indices = @transform_7, window_bounds = array<i64: 32, 32>}, {pipeline_mode = #tpu.pipeline_mode<synchronous>, transform_indices = @transform_8, window_bounds = array<i64: 1, 32>}, {pipeline_mode = #tpu.pipeline_mode<synchronous>, transform_indices = @transform_9, window_bounds = array<i64: 32, 16>}, {pipeline_mode = #tpu.pipeline_mode<synchronous>, transform_indices = @transform_10, window_bounds = array<i64: 1, 16>}, {pipeline_mode = #tpu.pipeline_mode<synchronous>, transform_indices = @transform_11, window_bounds = array<i64: 16, 2>}, {pipeline_mode = #tpu.pipeline_mode<synchronous>, transform_indices = @transform_12, window_bounds = array<i64: 1, 2>}, {transform_indices = @transform_13, window_bounds = array<i64: 8, 256>}]} {
    %c0 = arith.constant 0 : index
    %c0_0 = arith.constant 0 : index
    %0 = vector.load %arg1[%c0, %c0_0] : memref<8x256xf32, #tpu.memory_space<vmem>>, vector<8x256xf32>
    %c0_1 = arith.constant 0 : index
    %c0_2 = arith.constant 0 : index
    %1 = vector.load %arg2[%c0_1, %c0_2] : memref<256x128xf32, #tpu.memory_space<vmem>>, vector<256x128xf32>
    %cst = arith.constant dense<0.000000e+00> : vector<8x128xf32>
    %2 = tpu.matmul %0, %1, %cst {dimension_numbers = #tpu.dot_dimension_numbers<[1], [0], [0], [1], [0, 0, 1, 1], [], []>} : vector<8x256xf32>, vector<256x128xf32>, vector<8x128xf32> -> vector<8x128xf32>
    %c0_3 = arith.constant 0 : index
    %c0_4 = arith.constant 0 : index
    %3 = vector.load %arg3[%c0_3, %c0_4] : memref<1x128xf32, #tpu.memory_space<vmem>>, vector<1x128xf32>
    %4 = vector.broadcast %3 : vector<1x128xf32> to vector<8x128xf32>
    %5 = arith.addf %2, %4 : vector<8x128xf32>
    %c0_5 = arith.constant 0 : index
    %c0_6 = arith.constant 0 : index
    %6 = vector.load %arg14[%c0_5, %c0_6] : memref<8x256xf32, #tpu.memory_space<vmem>>, vector<8x128xf32>
    tpu.vector_store %arg14[%c0_5, %c0_6], %5 {strides = array<i32>} : memref<8x256xf32, #tpu.memory_space<vmem>>, vector<8x128xf32>,
    %cst_7 = arith.constant 0.000000e+00 : f32
    %7 = vector.broadcast %cst_7 : f32 to vector<8x128xf32>
    %8 = arith.maximumf %5, %7 : vector<8x128xf32>
    %c0_8 = arith.constant 0 : index
    %c0_9 = arith.constant 0 : index
    %9 = vector.load %arg4[%c0_8, %c0_9] : memref<128x64xf32, #tpu.memory_space<vmem>>, vector<128x64xf32>
    %cst_10 = arith.constant dense<0.000000e+00> : vector<8x64xf32>
    %10 = tpu.matmul %8, %9, %cst_10 {dimension_numbers = #tpu.dot_dimension_numbers<[1], [0], [0], [1], [0, 0, 1, 1], [], []>} : vector<8x128xf32>, vector<128x64xf32>, vector<8x64xf32> -> vector<8x64xf32>
    %c0_11 = arith.constant 0 : index
    %c0_12 = arith.constant 0 : index
    %11 = vector.load %arg5[%c0_11, %c0_12] : memref<1x64xf32, #tpu.memory_space<vmem>>, vector<1x64xf32>
    %12 = vector.broadcast %11 : vector<1x64xf32> to vector<8x64xf32>
    %13 = arith.addf %10, %12 : vector<8x64xf32>
    %c0_13 = arith.constant 0 : index
    %c128 = arith.constant 128 : index
    %14 = vector.load %arg14[%c0_13, %c128] : memref<8x256xf32, #tpu.memory_space<vmem>>, vector<8x64xf32>
    tpu.vector_store %arg14[%c0_13, %c128], %13 {strides = array<i32>} : memref<8x256xf32, #tpu.memory_space<vmem>>, vector<8x64xf32>,
    %cst_14 = arith.constant 0.000000e+00 : f32
    %15 = vector.broadcast %cst_14 : f32 to vector<8x64xf32>
    %16 = arith.maximumf %13, %15 : vector<8x64xf32>
    %c0_15 = arith.constant 0 : index
    %c0_16 = arith.constant 0 : index
    %17 = vector.load %arg6[%c0_15, %c0_16] : memref<64x32xf32, #tpu.memory_space<vmem>>, vector<64x32xf32>
    %cst_17 = arith.constant dense<0.000000e+00> : vector<8x32xf32>
    %18 = tpu.matmul %16, %17, %cst_17 {dimension_numbers = #tpu.dot_dimension_numbers<[1], [0], [0], [1], [0, 0, 1, 1], [], []>} : vector<8x64xf32>, vector<64x32xf32>, vector<8x32xf32> -> vector<8x32xf32>
    %c0_18 = arith.constant 0 : index
    %c0_19 = arith.constant 0 : index
    %19 = vector.load %arg7[%c0_18, %c0_19] : memref<1x32xf32, #tpu.memory_space<vmem>>, vector<1x32xf32>
    %20 = vector.broadcast %19 : vector<1x32xf32> to vector<8x32xf32>
    %21 = arith.addf %18, %20 : vector<8x32xf32>
    %cst_20 = arith.constant 0.000000e+00 : f32
    %22 = vector.broadcast %cst_20 : f32 to vector<8x32xf32>
    %23 = arith.maximumf %21, %22 : vector<8x32xf32>
    %c0_21 = arith.constant 0 : index
    %c0_22 = arith.constant 0 : index
    %24 = vector.load %arg8[%c0_21, %c0_22] : memref<32x32xf32, #tpu.memory_space<vmem>>, vector<32x32xf32>
    %cst_23 = arith.constant dense<0.000000e+00> : vector<8x32xf32>
    %25 = tpu.matmul %23, %24, %cst_23 {dimension_numbers = #tpu.dot_dimension_numbers<[1], [0], [0], [1], [0, 0, 1, 1], [], []>} : vector<8x32xf32>, vector<32x32xf32>, vector<8x32xf32> -> vector<8x32xf32>
    %c0_24 = arith.constant 0 : index
    %c0_25 = arith.constant 0 : index
    %26 = vector.load %arg9[%c0_24, %c0_25] : memref<1x32xf32, #tpu.memory_space<vmem>>, vector<1x32xf32>
    %27 = vector.broadcast %26 : vector<1x32xf32> to vector<8x32xf32>
    %28 = arith.addf %25, %27 : vector<8x32xf32>
    %c0_26 = arith.constant 0 : index
    %c192 = arith.constant 192 : index
    %29 = vector.load %arg14[%c0_26, %c192] : memref<8x256xf32, #tpu.memory_space<vmem>>, vector<8x32xf32>
    tpu.vector_store %arg14[%c0_26, %c192], %28 {strides = array<i32>} : memref<8x256xf32, #tpu.memory_space<vmem>>, vector<8x32xf32>,
    %cst_27 = arith.constant 0.000000e+00 : f32
    %30 = vector.broadcast %cst_27 : f32 to vector<8x32xf32>
    %31 = arith.maximumf %28, %30 : vector<8x32xf32>
    %c0_28 = arith.constant 0 : index
    %c0_29 = arith.constant 0 : index
    %32 = vector.load %arg10[%c0_28, %c0_29] : memref<32x16xf32, #tpu.memory_space<vmem>>, vector<32x16xf32>
    %cst_30 = arith.constant dense<0.000000e+00> : vector<8x16xf32>
    %33 = tpu.matmul %31, %32, %cst_30 {dimension_numbers = #tpu.dot_dimension_numbers<[1], [0], [0], [1], [0, 0, 1, 1], [], []>} : vector<8x32xf32>, vector<32x16xf32>, vector<8x16xf32> -> vector<8x16xf32>
    %c0_31 = arith.constant 0 : index
    %c0_32 = arith.constant 0 : index
    %34 = vector.load %arg11[%c0_31, %c0_32] : memref<1x16xf32, #tpu.memory_space<vmem>>, vector<1x16xf32>
    %35 = vector.broadcast %34 : vector<1x16xf32> to vector<8x16xf32>
    %36 = arith.addf %33, %35 : vector<8x16xf32>
    %c0_33 = arith.constant 0 : index
    %c224 = arith.constant 224 : index
    %37 = vector.load %arg14[%c0_33, %c224] : memref<8x256xf32, #tpu.memory_space<vmem>>, vector<8x16xf32>
    tpu.vector_store %arg14[%c0_33, %c224], %36 {strides = array<i32>} : memref<8x256xf32, #tpu.memory_space<vmem>>, vector<8x16xf32>,
    %cst_34 = arith.constant 0.000000e+00 : f32
    %38 = vector.broadcast %cst_34 : f32 to vector<8x16xf32>
    %39 = arith.maximumf %36, %38 : vector<8x16xf32>
    %c0_35 = arith.constant 0 : index
    %c0_36 = arith.constant 0 : index
    %40 = vector.load %arg12[%c0_35, %c0_36] : memref<16x2xf32, #tpu.memory_space<vmem>>, vector<16x2xf32>
    %cst_37 = arith.constant dense<0.000000e+00> : vector<8x2xf32>
    %41 = tpu.matmul %39, %40, %cst_37 {dimension_numbers = #tpu.dot_dimension_numbers<[1], [0], [0], [1], [0, 0, 1, 1], [], []>} : vector<8x16xf32>, vector<16x2xf32>, vector<8x2xf32> -> vector<8x2xf32>
    %c0_38 = arith.constant 0 : index
    %c0_39 = arith.constant 0 : index
    %42 = vector.load %arg13[%c0_38, %c0_39] : memref<1x2xf32, #tpu.memory_space<vmem>>, vector<1x2xf32>
    %43 = vector.broadcast %42 : vector<1x2xf32> to vector<8x2xf32>
    %44 = arith.addf %41, %43 : vector<8x2xf32>
    %c0_40 = arith.constant 0 : index
    %c240 = arith.constant 240 : index
    %45 = vector.load %arg14[%c0_40, %c240] : memref<8x256xf32, #tpu.memory_space<vmem>>, vector<8x2xf32>
    tpu.vector_store %arg14[%c0_40, %c240], %44 {strides = array<i32>} : memref<8x256xf32, #tpu.memory_space<vmem>>, vector<8x2xf32>,
    return
  }
  func.func @transform_0(%arg0: i32) -> (i32, i32) {
    %c0_i32 = arith.constant 0 : i32
    %c0_i32_0 = arith.constant 0 : i32
    return %arg0, %c0_i32 : i32, i32
  }
  func.func @transform_1(%arg0: i32) -> (i32, i32) {
    %c0_i32 = arith.constant 0 : i32
    %c0_i32_0 = arith.constant 0 : i32
    %c0_i32_1 = arith.constant 0 : i32
    return %c0_i32, %c0_i32_0 : i32, i32
  }
  func.func @transform_2(%arg0: i32) -> (i32, i32) {
    %c0_i32 = arith.constant 0 : i32
    %c0_i32_0 = arith.constant 0 : i32
    %c0_i32_1 = arith.constant 0 : i32
    return %c0_i32, %c0_i32_0 : i32, i32
  }
  func.func @transform_3(%arg0: i32) -> (i32, i32) {
    %c0_i32 = arith.constant 0 : i32
    %c0_i32_0 = arith.constant 0 : i32
    %c0_i32_1 = arith.constant 0 : i32
    return %c0_i32, %c0_i32_0 : i32, i32
  }
  func.func @transform_4(%arg0: i32) -> (i32, i32) {
    %c0_i32 = arith.constant 0 : i32
    %c0_i32_0 = arith.constant 0 : i32
    %c0_i32_1 = arith.constant 0 : i32
    return %c0_i32, %c0_i32_0 : i32, i32
  }
  func.func @transform_5(%arg0: i32) -> (i32, i32) {
    %c0_i32 = arith.constant 0 : i32
    %c0_i32_0 = arith.constant 0 : i32
    %c0_i32_1 = arith.constant 0 : i32
    return %c0_i32, %c0_i32_0 : i32, i32
  }
  func.func @transform_6(%arg0: i32) -> (i32, i32) {
    %c0_i32 = arith.constant 0 : i32
    %c0_i32_0 = arith.constant 0 : i32
    %c0_i32_1 = arith.constant 0 : i32
    return %c0_i32, %c0_i32_0 : i32, i32
  }
  func.func @transform_7(%arg0: i32) -> (i32, i32) {
    %c0_i32 = arith.constant 0 : i32
    %c0_i32_0 = arith.constant 0 : i32
    %c0_i32_1 = arith.constant 0 : i32
    return %c0_i32, %c0_i32_0 : i32, i32
  }
  func.func @transform_8(%arg0: i32) -> (i32, i32) {
    %c0_i32 = arith.constant 0 : i32
    %c0_i32_0 = arith.constant 0 : i32
    %c0_i32_1 = arith.constant 0 : i32
    return %c0_i32, %c0_i32_0 : i32, i32
  }
  func.func @transform_9(%arg0: i32) -> (i32, i32) {
    %c0_i32 = arith.constant 0 : i32
    %c0_i32_0 = arith.constant 0 : i32
    %c0_i32_1 = arith.constant 0 : i32
    return %c0_i32, %c0_i32_0 : i32, i32
  }
  func.func @transform_10(%arg0: i32) -> (i32, i32) {
    %c0_i32 = arith.constant 0 : i32
    %c0_i32_0 = arith.constant 0 : i32
    %c0_i32_1 = arith.constant 0 : i32
    return %c0_i32, %c0_i32_0 : i32, i32
  }
  func.func @transform_11(%arg0: i32) -> (i32, i32) {
    %c0_i32 = arith.constant 0 : i32
    %c0_i32_0 = arith.constant 0 : i32
    %c0_i32_1 = arith.constant 0 : i32
    return %c0_i32, %c0_i32_0 : i32, i32
  }
  func.func @transform_12(%arg0: i32) -> (i32, i32) {
    %c0_i32 = arith.constant 0 : i32
    %c0_i32_0 = arith.constant 0 : i32
    %c0_i32_1 = arith.constant 0 : i32
    return %c0_i32, %c0_i32_0 : i32, i32
  }
  func.func @transform_13(%arg0: i32) -> (i32, i32) {
    %c0_i32 = arith.constant 0 : i32
    %c0_i32_0 = arith.constant 0 : i32
    return %arg0, %c0_i32 : i32, i32
  }
}

module attributes {stable_mosaic.version = 11 : i64} {
  func.func @_mlp_kernel(%arg0: i32, %arg1: memref<8x256xf32, #tpu.memory_space<vmem>>, %arg2: memref<256x128xf32, #tpu.memory_space<vmem>>, %arg3: memref<1x128xf32, #tpu.memory_space<vmem>>, %arg4: memref<128x64xf32, #tpu.memory_space<vmem>>, %arg5: memref<1x64xf32, #tpu.memory_space<vmem>>, %arg6: memref<64x32xf32, #tpu.memory_space<vmem>>, %arg7: memref<1x32xf32, #tpu.memory_space<vmem>>, %arg8: memref<32x32xf32, #tpu.memory_space<vmem>>, %arg9: memref<1x32xf32, #tpu.memory_space<vmem>>, %arg10: memref<32x16xf32, #tpu.memory_space<vmem>>, %arg11: memref<1x16xf32, #tpu.memory_space<vmem>>, %arg12: memref<16x2xf32, #tpu.memory_space<vmem>>, %arg13: memref<1x2xf32, #tpu.memory_space<vmem>>, %arg14: memref<8x256xf32, #tpu.memory_space<vmem>>) attributes {dimension_semantics = [#tpu.dimension_semantics<parallel>], iteration_bounds = array<i64: 2>, scalar_prefetch = 0 : i64, scratch_operands = 0 : i64, tpu.core_type = #tpu.core_type<tc>, window_params = [{transform_indices = @transform_0, window_bounds = array<i64: 8, 256>}, {pipeline_mode = #tpu.pipeline_mode<synchronous>, transform_indices = @transform_1, window_bounds = array<i64: 256, 128>}, {pipeline_mode = #tpu.pipeline_mode<synchronous>, transform_indices = @transform_2, window_bounds = array<i64: 1, 128>}, {pipeline_mode = #tpu.pipeline_mode<synchronous>, transform_indices = @transform_3, window_bounds = array<i64: 128, 64>}, {pipeline_mode = #tpu.pipeline_mode<synchronous>, transform_indices = @transform_4, window_bounds = array<i64: 1, 64>}, {pipeline_mode = #tpu.pipeline_mode<synchronous>, transform_indices = @transform_5, window_bounds = array<i64: 64, 32>}, {pipeline_mode = #tpu.pipeline_mode<synchronous>, transform_indices = @transform_6, window_bounds = array<i64: 1, 32>}, {pipeline_mode = #tpu.pipeline_mode<synchronous>, transform_indices = @transform_7, window_bounds = array<i64: 32, 32>}, {pipeline_mode = #tpu.pipeline_mode<synchronous>, transform_indices = @transform_8, window_bounds = array<i64: 1, 32>}, {pipeline_mode = #tpu.pipeline_mode<synchronous>, transform_indices = @transform_9, window_bounds = array<i64: 32, 16>}, {pipeline_mode = #tpu.pipeline_mode<synchronous>, transform_indices = @transform_10, window_bounds = array<i64: 1, 16>}, {pipeline_mode = #tpu.pipeline_mode<synchronous>, transform_indices = @transform_11, window_bounds = array<i64: 16, 2>}, {pipeline_mode = #tpu.pipeline_mode<synchronous>, transform_indices = @transform_12, window_bounds = array<i64: 1, 2>}, {transform_indices = @transform_13, window_bounds = array<i64: 8, 256>}]} {
    %c0 = arith.constant 0 : index
    %c0_0 = arith.constant 0 : index
    %0 = vector.load %arg1[%c0, %c0_0] : memref<8x256xf32, #tpu.memory_space<vmem>>, vector<8x256xf32>
    %c0_1 = arith.constant 0 : index
    %c0_2 = arith.constant 0 : index
    %1 = vector.load %arg2[%c0_1, %c0_2] : memref<256x128xf32, #tpu.memory_space<vmem>>, vector<256x128xf32>
    %cst = arith.constant dense<0.000000e+00> : vector<8x128xf32>
    %2 = tpu.matmul %0, %1, %cst {dimension_numbers = #tpu.dot_dimension_numbers<[1], [0], [0], [1], [0, 0, 1, 1], [], []>} : vector<8x256xf32>, vector<256x128xf32>, vector<8x128xf32> -> vector<8x128xf32>
    %c0_3 = arith.constant 0 : index
    %c0_4 = arith.constant 0 : index
    %3 = vector.load %arg3[%c0_3, %c0_4] : memref<1x128xf32, #tpu.memory_space<vmem>>, vector<1x128xf32>
    %4 = vector.broadcast %3 : vector<1x128xf32> to vector<8x128xf32>
    %5 = arith.addf %2, %4 : vector<8x128xf32>
    %c0_5 = arith.constant 0 : index
    %c0_6 = arith.constant 0 : index
    %6 = vector.load %arg14[%c0_5, %c0_6] : memref<8x256xf32, #tpu.memory_space<vmem>>, vector<8x128xf32>
    tpu.vector_store %arg14[%c0_5, %c0_6], %5 {strides = array<i32>} : memref<8x256xf32, #tpu.memory_space<vmem>>, vector<8x128xf32>,
    %cst_7 = arith.constant 0.000000e+00 : f32
    %7 = vector.broadcast %cst_7 : f32 to vector<8x128xf32>
    %8 = arith.maximumf %5, %7 : vector<8x128xf32>
    %c0_8 = arith.constant 0 : index
    %c0_9 = arith.constant 0 : index
    %9 = vector.load %arg4[%c0_8, %c0_9] : memref<128x64xf32, #tpu.memory_space<vmem>>, vector<128x64xf32>
    %cst_10 = arith.constant dense<0.000000e+00> : vector<8x64xf32>
    %10 = tpu.matmul %8, %9, %cst_10 {dimension_numbers = #tpu.dot_dimension_numbers<[1], [0], [0], [1], [0, 0, 1, 1], [], []>} : vector<8x128xf32>, vector<128x64xf32>, vector<8x64xf32> -> vector<8x64xf32>
    %c0_11 = arith.constant 0 : index
    %c0_12 = arith.constant 0 : index
    %11 = vector.load %arg5[%c0_11, %c0_12] : memref<1x64xf32, #tpu.memory_space<vmem>>, vector<1x64xf32>
    %12 = vector.broadcast %11 : vector<1x64xf32> to vector<8x64xf32>
    %13 = arith.addf %10, %12 : vector<8x64xf32>
    %c0_13 = arith.constant 0 : index
    %c128 = arith.constant 128 : index
    %14 = vector.load %arg14[%c0_13, %c128] : memref<8x256xf32, #tpu.memory_space<vmem>>, vector<8x64xf32>
    tpu.vector_store %arg14[%c0_13, %c128], %13 {strides = array<i32>} : memref<8x256xf32, #tpu.memory_space<vmem>>, vector<8x64xf32>,
    %cst_14 = arith.constant 0.000000e+00 : f32
    %15 = vector.broadcast %cst_14 : f32 to vector<8x64xf32>
    %16 = arith.maximumf %13, %15 : vector<8x64xf32>
    %c0_15 = arith.constant 0 : index
    %c0_16 = arith.constant 0 : index
    %17 = vector.load %arg6[%c0_15, %c0_16] : memref<64x32xf32, #tpu.memory_space<vmem>>, vector<64x32xf32>
    %cst_17 = arith.constant dense<0.000000e+00> : vector<8x32xf32>
    %18 = tpu.matmul %16, %17, %cst_17 {dimension_numbers = #tpu.dot_dimension_numbers<[1], [0], [0], [1], [0, 0, 1, 1], [], []>} : vector<8x64xf32>, vector<64x32xf32>, vector<8x32xf32> -> vector<8x32xf32>
    %c0_18 = arith.constant 0 : index
    %c0_19 = arith.constant 0 : index
    %19 = vector.load %arg7[%c0_18, %c0_19] : memref<1x32xf32, #tpu.memory_space<vmem>>, vector<1x32xf32>
    %20 = vector.broadcast %19 : vector<1x32xf32> to vector<8x32xf32>
    %21 = arith.addf %18, %20 : vector<8x32xf32>
    %cst_20 = arith.constant 0.000000e+00 : f32
    %22 = vector.broadcast %cst_20 : f32 to vector<8x32xf32>
    %23 = arith.maximumf %21, %22 : vector<8x32xf32>
    %c0_21 = arith.constant 0 : index
    %c0_22 = arith.constant 0 : index
    %24 = vector.load %arg8[%c0_21, %c0_22] : memref<32x32xf32, #tpu.memory_space<vmem>>, vector<32x32xf32>
    %cst_23 = arith.constant dense<0.000000e+00> : vector<8x32xf32>
    %25 = tpu.matmul %23, %24, %cst_23 {dimension_numbers = #tpu.dot_dimension_numbers<[1], [0], [0], [1], [0, 0, 1, 1], [], []>} : vector<8x32xf32>, vector<32x32xf32>, vector<8x32xf32> -> vector<8x32xf32>
    %c0_24 = arith.constant 0 : index
    %c0_25 = arith.constant 0 : index
    %26 = vector.load %arg9[%c0_24, %c0_25] : memref<1x32xf32, #tpu.memory_space<vmem>>, vector<1x32xf32>
    %27 = vector.broadcast %26 : vector<1x32xf32> to vector<8x32xf32>
    %28 = arith.addf %25, %27 : vector<8x32xf32>
    %c0_26 = arith.constant 0 : index
    %c192 = arith.constant 192 : index
    %29 = vector.load %arg14[%c0_26, %c192] : memref<8x256xf32, #tpu.memory_space<vmem>>, vector<8x32xf32>
    tpu.vector_store %arg14[%c0_26, %c192], %28 {strides = array<i32>} : memref<8x256xf32, #tpu.memory_space<vmem>>, vector<8x32xf32>,
    %cst_27 = arith.constant 0.000000e+00 : f32
    %30 = vector.broadcast %cst_27 : f32 to vector<8x32xf32>
    %31 = arith.maximumf %28, %30 : vector<8x32xf32>
    %c0_28 = arith.constant 0 : index
    %c0_29 = arith.constant 0 : index
    %32 = vector.load %arg10[%c0_28, %c0_29] : memref<32x16xf32, #tpu.memory_space<vmem>>, vector<32x16xf32>
    %cst_30 = arith.constant dense<0.000000e+00> : vector<8x16xf32>
    %33 = tpu.matmul %31, %32, %cst_30 {dimension_numbers = #tpu.dot_dimension_numbers<[1], [0], [0], [1], [0, 0, 1, 1], [], []>} : vector<8x32xf32>, vector<32x16xf32>, vector<8x16xf32> -> vector<8x16xf32>
    %c0_31 = arith.constant 0 : index
    %c0_32 = arith.constant 0 : index
    %34 = vector.load %arg11[%c0_31, %c0_32] : memref<1x16xf32, #tpu.memory_space<vmem>>, vector<1x16xf32>
    %35 = vector.broadcast %34 : vector<1x16xf32> to vector<8x16xf32>
    %36 = arith.addf %33, %35 : vector<8x16xf32>
    %c0_33 = arith.constant 0 : index
    %c224 = arith.constant 224 : index
    %37 = vector.load %arg14[%c0_33, %c224] : memref<8x256xf32, #tpu.memory_space<vmem>>, vector<8x16xf32>
    tpu.vector_store %arg14[%c0_33, %c224], %36 {strides = array<i32>} : memref<8x256xf32, #tpu.memory_space<vmem>>, vector<8x16xf32>,
    %cst_34 = arith.constant 0.000000e+00 : f32
    %38 = vector.broadcast %cst_34 : f32 to vector<8x16xf32>
    %39 = arith.maximumf %36, %38 : vector<8x16xf32>
    %c0_35 = arith.constant 0 : index
    %c0_36 = arith.constant 0 : index
    %40 = vector.load %arg12[%c0_35, %c0_36] : memref<16x2xf32, #tpu.memory_space<vmem>>, vector<16x2xf32>
    %cst_37 = arith.constant dense<0.000000e+00> : vector<8x2xf32>
    %41 = tpu.matmul %39, %40, %cst_37 {dimension_numbers = #tpu.dot_dimension_numbers<[1], [0], [0], [1], [0, 0, 1, 1], [], []>} : vector<8x16xf32>, vector<16x2xf32>, vector<8x2xf32> -> vector<8x2xf32>
    %c0_38 = arith.constant 0 : index
    %c0_39 = arith.constant 0 : index
    %42 = vector.load %arg13[%c0_38, %c0_39] : memref<1x2xf32, #tpu.memory_space<vmem>>, vector<1x2xf32>
    %43 = vector.broadcast %42 : vector<1x2xf32> to vector<8x2xf32>
    %44 = arith.addf %41, %43 : vector<8x2xf32>
    %c0_40 = arith.constant 0 : index
    %c240 = arith.constant 240 : index
    %45 = vector.load %arg14[%c0_40, %c240] : memref<8x256xf32, #tpu.memory_space<vmem>>, vector<8x2xf32>
    tpu.vector_store %arg14[%c0_40, %c240], %44 {strides = array<i32>} : memref<8x256xf32, #tpu.memory_space<vmem>>, vector<8x2xf32>,
    return
  }
  func.func @transform_0(%arg0: i32) -> (i32, i32) {
    %c0_i32 = arith.constant 0 : i32
    %c0_i32_0 = arith.constant 0 : i32
    return %arg0, %c0_i32 : i32, i32
  }
  func.func @transform_1(%arg0: i32) -> (i32, i32) {
    %c0_i32 = arith.constant 0 : i32
    %c0_i32_0 = arith.constant 0 : i32
    %c0_i32_1 = arith.constant 0 : i32
    return %c0_i32, %c0_i32_0 : i32, i32
  }
  func.func @transform_2(%arg0: i32) -> (i32, i32) {
    %c0_i32 = arith.constant 0 : i32
    %c0_i32_0 = arith.constant 0 : i32
    %c0_i32_1 = arith.constant 0 : i32
    return %c0_i32, %c0_i32_0 : i32, i32
  }
  func.func @transform_3(%arg0: i32) -> (i32, i32) {
    %c0_i32 = arith.constant 0 : i32
    %c0_i32_0 = arith.constant 0 : i32
    %c0_i32_1 = arith.constant 0 : i32
    return %c0_i32, %c0_i32_0 : i32, i32
  }
  func.func @transform_4(%arg0: i32) -> (i32, i32) {
    %c0_i32 = arith.constant 0 : i32
    %c0_i32_0 = arith.constant 0 : i32
    %c0_i32_1 = arith.constant 0 : i32
    return %c0_i32, %c0_i32_0 : i32, i32
  }
  func.func @transform_5(%arg0: i32) -> (i32, i32) {
    %c0_i32 = arith.constant 0 : i32
    %c0_i32_0 = arith.constant 0 : i32
    %c0_i32_1 = arith.constant 0 : i32
    return %c0_i32, %c0_i32_0 : i32, i32
  }
  func.func @transform_6(%arg0: i32) -> (i32, i32) {
    %c0_i32 = arith.constant 0 : i32
    %c0_i32_0 = arith.constant 0 : i32
    %c0_i32_1 = arith.constant 0 : i32
    return %c0_i32, %c0_i32_0 : i32, i32
  }
  func.func @transform_7(%arg0: i32) -> (i32, i32) {
    %c0_i32 = arith.constant 0 : i32
    %c0_i32_0 = arith.constant 0 : i32
    %c0_i32_1 = arith.constant 0 : i32
    return %c0_i32, %c0_i32_0 : i32, i32
  }
  func.func @transform_8(%arg0: i32) -> (i32, i32) {
    %c0_i32 = arith.constant 0 : i32
    %c0_i32_0 = arith.constant 0 : i32
    %c0_i32_1 = arith.constant 0 : i32
    return %c0_i32, %c0_i32_0 : i32, i32
  }
  func.func @transform_9(%arg0: i32) -> (i32, i32) {
    %c0_i32 = arith.constant 0 : i32
    %c0_i32_0 = arith.constant 0 : i32
    %c0_i32_1 = arith.constant 0 : i32
    return %c0_i32, %c0_i32_0 : i32, i32
  }
  func.func @transform_10(%arg0: i32) -> (i32, i32) {
    %c0_i32 = arith.constant 0 : i32
    %c0_i32_0 = arith.constant 0 : i32
    %c0_i32_1 = arith.constant 0 : i32
    return %c0_i32, %c0_i32_0 : i32, i32
  }
  func.func @transform_11(%arg0: i32) -> (i32, i32) {
    %c0_i32 = arith.constant 0 : i32
    %c0_i32_0 = arith.constant 0 : i32
    %c0_i32_1 = arith.constant 0 : i32
    return %c0_i32, %c0_i32_0 : i32, i32
  }
  func.func @transform_12(%arg0: i32) -> (i32, i32) {
    %c0_i32 = arith.constant 0 : i32
    %c0_i32_0 = arith.constant 0 : i32
    %c0_i32_1 = arith.constant 0 : i32
    return %c0_i32, %c0_i32_0 : i32, i32
  }
  func.func @transform_13(%arg0: i32) -> (i32, i32) {
    %c0_i32 = arith.constant 0 : i32
    %c0_i32_0 = arith.constant 0 : i32
    return %arg0, %c0_i32 : i32, i32
  }
}

</mosaic_0001>

<bundles_post_ra>
// kernel: tpu_custom_call.1
= control target key start
LH: loop header
LB: loop body
LE: loop exit
PB: predicated region body
PF: predicated region fallthrough
CT: control target
= control target key end

     0   :  { %s1298_s0 = inlined_call_operand.vmem [shape: f32[16,256], index: 0, kind: input, shape index: {}]   ;;  %s1299_s1 = inlined_call_operand.hbm [shape: f32[256,128], index: 1, kind: input, shape index: {}]   ;;  %s1300_s2 = inlined_call_operand.vmem [shape: f32[1,128], index: 2, kind: input, shape index: {}]   ;;  %s1301_s3 = inlined_call_operand.vmem [shape: f32[128,64], index: 3, kind: input, shape index: {}]   ;;  %s1302_s4 = inlined_call_operand.vmem [shape: f32[1,64], index: 4, kind: input, shape index: {}]   ;;  %s1303_s5 = inlined_call_operand.vmem [shape: f32[64,32], index: 5, kind: input, shape index: {}]   ;;  %s1304_s6 = inlined_call_operand.vmem [shape: f32[1,32], index: 6, kind: input, shape index: {}]   ;;  %s1305_s7 = inlined_call_operand.vmem [shape: f32[32,32], index: 7, kind: input, shape index: {}]   ;;  %s1306_s8 = inlined_call_operand.vmem [shape: f32[1,32], index: 8, kind: input, shape index: {}]   ;;  %s1307_s9 = inlined_call_operand.vmem [shape: f32[32,16], index: 9, kind: input, shape index: {}]   ;;  %s1308_s10 = inlined_call_operand.vmem [shape: f32[1,16], index: 10, kind: input, shape index: {}]   ;;  %s1309_s11 = inlined_call_operand.vmem [shape: f32[16,2], index: 11, kind: input, shape index: {}]   ;;  %s1310_s12 = inlined_call_operand.vmem [shape: f32[1,2], index: 12, kind: input, shape index: {}]   ;;  %s1311_s13 = inlined_call_operand.hbm [shape: f32[16,256], index: 13, kind: output, shape index: {}]  }
   0x1   :  { %1313 = sst [smem:[#allocation8_spill]] %s1298_s0 }
   0x2   :  { %1314 = sst [smem:[#allocation9_spill]] %s1299_s1 }
   0x3   :  { %1315 = sst [smem:[#allocation10_spill]] %s1300_s2 }
   0x4   :  { %1316 = sst [smem:[#allocation11_spill]] %s1301_s3 }
   0x5   :  { %18 = vsyncpa [#allocation3], 0 }
   0x6   :  { %19 = vsyncpa [#allocation4], 0 }
   0x7   :  { %21 = vsyncpa [#allocation4 + $0x1], 0  ;;  %s1071_s25 = smov 0   ;;  %s1073_s26 = smov 0  }
   0x8   :  { %s1075_s27 = smov 0   ;;  %s1077_s28 = smov 0  }
   0x9 LB: > { %s1092_s29 = sadd.s32 4294967295, %s993_s28   ;;  %s816_s30 = sadd.s32 4294967294, %s993_s28   ;;  %s993_s28 = sphi %s1077_s28, %s1327_s28   ;;  %s989_s27 = sphi %s1075_s27, %s1326_s27   ;;  %s985_s26 = sphi %s1073_s26, %s1325_s26   ;;  %s981_s25 = sphi %s1071_s25, %s1324_s25  }
   0xa   : > { %s1096_s14 = sadd.s32 1, %s993_s28   ;;  %s312_s15 = sadd.s32 1, %s989_s27 }
   0xb   : > { %s309_s16 = ssub.s32 %s993_s28, %s1096_s14  ;;  %p322_p0 = scmp.ne.s32.totalorder %s989_s27, %s985_s26 }
   0xc   : > { %p310_p1 = scmp.eq.s32.totalorder %s309_s16, 0  ;;  %p323_p2 = scmp.eq.s32.totalorder %s1092_s29, 1 }
   0xd   : > { %p328_p3 = scmp.ne.s32.totalorder %s985_s26, %s981_s25  ;;  %p329_p4 = scmp.eq.s32.totalorder %s816_s30, 1 }
   0xe   : > { %s1107_s17 = scalar_select %p310_p1, %s989_s27, %s312_s15  }
   0xf   : > { %p1109_p5 = por %p323_p2, %p322_p0  ;;  %p1113_p6 = por %p329_p4, %p328_p3 }
  0x10   : > { %p817_p7 = scmp.ge.s32.totalorder %s993_s28, 1  ;;  %p336_p8 = scmp.lt.s32.totalorder %s993_s28, 3 }
  0x11   : > { %p850_p9 = scmp.eq.s32.totalorder %s1092_s29, 0  ;;  %s1319_s1 = sld [smem:[#allocation9_spill]] }
  0x12   : > { %p337_p10 = pnand %p817_p7, %p336_p8  ;;  %s995_s23 = smov [#allocation2]  }
  0x13   : > { %s349_s24 = sshll.u32 %s995_s23, 4  ;;  %s996_s30 = smov 128   ;;  %s350_s24 = int_to_ptr.vmem [resolvable:$true] %s349_s24 }
  0x14   : > { %p842_p11 = pneg %p337_p10  ;;  %s997_s15 = smov 8  }
  0x15   : > { %406 = sbr.rel (%p337_p10) target bundleno = 981 (0x3d5), region = 72 }
  0x16   : > { %p843_p12 = pnand %p850_p9, %p842_p11 }
  0x17   : > { %s347_s22 = sshll.u32 %s1319_s1, 4  ;;  %s348_s22 = int_to_ptr.hbm [resolvable:$true] %s347_s22 }
  0x18   : > { %845 = dma.hbm_to_vmem [thread:$0]  (!%p843_p12), %s348_s22, 4096, %s350_s24, [#allocation3], %s996_s30, %s996_s30, %s997_s15  }
  0x1a   : > { %972 = dma.done.wait (%p850_p9), [#allocation3], 4096  }
  0x1b   : > { %974 = vsyncadd (%p850_p9), [#allocation3], 4294963200  ;;  %v473_v0 = vld [vmem:[#allocation2 + $0x78] sm:$0xff]  ;;  %v472_v1 = vld [vmem:[#allocation2 + $0x70] sm:$0xff]  ;;  %s1320_s3 = sld [smem:[#allocation11_spill]]  ;;  %p451_p13 = scmp.lt.s32.totalorder %s1092_s29, 1 }
  0x1c   : > { %v489_v2 = vld [vmem:[#allocation2 + $0xf8] sm:$0xff]  ;;  %494 = vmatpush.msra.mxu0 %v473_v0  ;;  %v488_v3 = vld [vmem:[#allocation2 + $0xf0] sm:$0xff]  ;;  %v471_v4 = vld [vmem:[#allocation2 + $0x68] sm:$0xff]  ;;  %s1321_s0 = sld [smem:[#allocation8_spill]]  ;;  %s1312_s23 = sand.u32 1, %s985_s26   ;;  %vm576_vm0 = vcmask 523264  }
  0x1d   : > { %514 = vmatpush.msra.mxu1 %v489_v2  ;;  %v487_v5 = vld [vmem:[#allocation2 + $0xe8] sm:$0xff]  ;;  %v470_v6 = vld [vmem:[#allocation2 + $0x60] sm:$0xff]  ;;  %v469_v8 = vld [vmem:[#allocation2 + $0x58] sm:$0xff]  ;;  %s452_s21 = scalar_select %p451_p13, %s1092_s29, 1  ;;  %vm623_vm1 = vcmask 261120   ;;  %vm651_vm2 = vcmask 785920  }
  0x1e   : > { %495 = vmatpush.msra.mxu0 %v472_v1  ;;  %v486_v7 = vld [vmem:[#allocation2 + $0xe0] sm:$0xff]  ;;  %v485_v9 = vld [vmem:[#allocation2 + $0xd8] sm:$0xff]  ;;  %v468_v10 = vld [vmem:[#allocation2 + $0x50] sm:$0xff]  ;;  %s1322_s2 = sld [smem:[#allocation10_spill]]  ;;  %s998_s30 = smov 64   ;;  %vm698_vm3 = vcmask 130048  }
  0x1f   : > { %515 = vmatpush.msra.mxu1 %v488_v3  ;;  %v484_v11 = vld [vmem:[#allocation2 + $0xd0] sm:$0xff]  ;;  %v467_v12 = vld [vmem:[#allocation2 + $0x48] sm:$0xff]  ;;  %v466_v16 = vld [vmem:[#allocation2 + $0x40] sm:$0xff]  ;;  %s834_s15 = sshll.u32 %s452_s21, 4  ;;  %vm689_vm4 = vcmask 917248   ;;  %vm726_vm5 = vcmask 933760  }
  0x20   : > { %496 = vmatpush.msra.mxu0 %v471_v4  ;;  %v483_v13 = vld [vmem:[#allocation2 + $0xc8] sm:$0xff]  ;;  %v482_v17 = vld [vmem:[#allocation2 + $0xc0] sm:$0xff]  ;;  %v465_v19 = vld [vmem:[#allocation2 + $0x38] sm:$0xff] }
  0x21   : > { %516 = vmatpush.msra.mxu1 %v487_v5  ;;  %v551_v14 = vld [vmem:[%s1320_s3 + $0x78] sm:$0xff]  ;;  %v550_v15 = vld [vmem:[%s1320_s3 + $0x70] sm:$0xff]  ;;  %v549_v18 = vld [vmem:[%s1320_s3 + $0x68] sm:$0xff] }
  0x22   : > { %497 = vmatpush.msra.mxu0 %v470_v6  ;;  %556 = vmatpush.msra.mxu2 %v551_v14  ;;  %v464_v20 = vld [vmem:[#allocation2 + $0x30] sm:$0xff]  ;;  %v481_v21 = vld [vmem:[#allocation2 + $0xb8] sm:$0xff]  ;;  %v548_v23 = vld [vmem:[%s1320_s3 + $0x60] sm:$0xff]  ;;  %s455_s1 = scalar_lea.vmem %s1321_s0, %s834_s15  ;;  %s822_s0 = sshll.u32 %s1312_s23, 4 }
  0x23   : > { %517 = vmatpush.msra.mxu1 %v486_v7  ;;  %v480_v22 = vld [vmem:[#allocation2 + $0xb0] sm:$0xff]  ;;  %v547_v24 = vld [vmem:[%s1320_s3 + $0x58] sm:$0xff]  ;;  %v463_v25 = vld [vmem:[#allocation2 + $0x28] sm:$0xff] }
  0x24   : > { %498 = vmatpush.msra.mxu0 %v469_v8  ;;  %557 = vmatpush.msra.mxu2 %v550_v15  ;;  %v479_v26 = vld [vmem:[#allocation2 + $0xa8] sm:$0xff]  ;;  %v546_v27 = vld [vmem:[%s1320_s3 + $0x50] sm:$0xff]  ;;  %v462_v28 = vld [vmem:[#allocation2 + $0x20] sm:$0xff] }
  0x25   : > { %518 = vmatpush.msra.mxu1 %v485_v9  ;;  %v478_v29 = vld [vmem:[#allocation2 + $0xa0] sm:$0xff]  ;;  %v545_v30 = vld [vmem:[%s1320_s3 + $0x48] sm:$0xff]  ;;  %v461_v31 = vld [vmem:[#allocation2 + $0x18] sm:$0xff] }
  0x26   : > { %499 = vmatpush.msra.mxu0 %v468_v10  ;;  %558 = vmatpush.msra.mxu2 %v549_v18  ;;  %v477_v32 = vld [vmem:[#allocation2 + $0x98] sm:$0xff]  ;;  %v544_v33 = vld [vmem:[%s1320_s3 + $0x40] sm:$0xff]  ;;  %v460_v34 = vld [vmem:[#allocation2 + $0x10] sm:$0xff] }
  0x27   : > { %519 = vmatpush.msra.mxu1 %v484_v11  ;;  %v476_v35 = vld [vmem:[#allocation2 + $0x90] sm:$0xff]  ;;  %v543_v36 = vld [vmem:[%s1320_s3 + $0x38] sm:$0xff]  ;;  %v459_v37 = vld [vmem:[#allocation2 + $0x8] sm:$0xff] }
  0x28   : > { %500 = vmatpush.msra.mxu0 %v467_v12  ;;  %559 = vmatpush.msra.mxu2 %v548_v23  ;;  %v475_v38 = vld [vmem:[#allocation2 + $0x88] sm:$0xff]  ;;  %v542_v39 = vld [vmem:[%s1320_s3 + $0x30] sm:$0xff]  ;;  %v458_v40 = vld [vmem:[#allocation2] sm:$0xff] }
  0x29   : > { %520 = vmatpush.msra.mxu1 %v483_v13  ;;  %v474_v41 = vld [vmem:[#allocation2 + $0x80] sm:$0xff]  ;;  %v457_v43 = vld [vmem:[%s455_s1 + $0x8] sm:$0xff]  ;;  %v539_v46 = vld [vmem:[%s1320_s3 + $0x18] sm:$0xff] }
  0x2a   : > { %501 = vmatpush.msra.mxu0 %v466_v16  ;;  %560 = vmatpush.msra.mxu2 %v547_v24  ;;  %v456_v42 = vld [vmem:[%s455_s1] sm:$0xff]  ;;  %v541_v44 = vld [vmem:[%s1320_s3 + $0x28] sm:$0xff]  ;;  %v538_v47 = vld [vmem:[%s1320_s3 + $0x10] sm:$0xff]  ;;  %s1203_s1 = scalar_lea.vmem [#allocation5], %s822_s0  ;;  %s835_s0 = sshll.u32 %s1092_s29, 4 }
  0x2b   : > { %521 = vmatpush.msra.mxu1 %v482_v17  ;;  %v540_v45 = vld [vmem:[%s1320_s3 + $0x20] sm:$0xff]  ;;  %v537_v48 = vld [vmem:[%s1320_s3 + $0x8] sm:$0xff]  ;;  %v586_v50 = vld [vmem:[%s1303_s5 + $0x38] sm:$0xff]  ;;  %s740_s20 = scalar_lea.hbm %s1311_s13, %s835_s0  ;;  %s742_s22 = sshll.u32 %s1203_s1, 4  ;;  %s743_s22 = int_to_ptr.vmem [resolvable:$true] %s742_s22 }
  0x2c   : > { %502 = vmatpush.msra.mxu0 %v465_v19  ;;  %561 = vmatpush.msra.mxu2 %v546_v27  ;;  %v536_v49 = vld [vmem:[%s1320_s3] sm:$0xff]  ;;  %v585_v51 = vld [vmem:[%s1303_s5 + $0x30] sm:$0xff]  ;;  %v584_v52 = vld [vmem:[%s1303_s5 + $0x28] sm:$0xff]  ;;  %s744_s15 = sshll.u32 %s740_s20, 4  ;;  %s947_s0 = scalar_lea.hbm %s1311_s13, 32  ;;  %s745_s15 = int_to_ptr.hbm [resolvable:$true] %s744_s15 }
  0x2d   : > { %522 = vmatpush.msra.mxu1 %v481_v21  ;;  %602 = vmatpush.msra.mxu3 %v586_v50  ;;  %v583_v53 = vld [vmem:[%s1303_s5 + $0x20] sm:$0xff]  ;;  %v582_v54 = vld [vmem:[%s1303_s5 + $0x18] sm:$0xff]  ;;  %v581_v61 = vld [vmem:[%s1303_s5 + $0x10] sm:$0xff]  ;;  %s941_s24 = sshra.s32 %s745_s15, 4  ;;  %s942_s24 = int_to_ptr.hbm [resolvable:$true] %s941_s24 }
  0x2e   : > { %503 = vmatpush.msra.mxu0 %v464_v20  ;;  %562 = vmatpush.msra.mxu2 %v545_v30  ;;  %v891_v55 = vld [vmem:[%s1322_s2] ss:$0 sm:$0xff]  ;;  %v580_v62 = vld [vmem:[%s1303_s5 + $0x8] sm:$0xff]  ;;  %v618_v0 = vld [vmem:[%s1305_s7 + $0x18] sm:$0xff]  ;;  %s999_s2 = smov 96   ;;  %s943_s3 = scalar_lea.hbm %s942_s24, 16 }
  0x2f   : > { %523 = vmatpush.msra.mxu1 %v480_v22  ;;  %603 = vmatpush.msra.mxu3 %v585_v51  ;;  %v579_v63 = vld [vmem:[%s1303_s5] sm:$0xff]  ;;  %v617_v1 = vld [vmem:[%s1305_s7 + $0x10] sm:$0xff]  ;;  %v616_v6 = vld [vmem:[%s1305_s7 + $0x8] sm:$0xff]  ;;  %p944_p0 = scmp.ne.s32.totalorder %s942_s24, %s943_s3  ;;  %p948_p3 = scmp.lt.s32.totalorder %s942_s24, %s1311_s13 }
  0x30   : > { %504 = vmatpush.msra.mxu0 %v463_v25  ;;  %563 = vmatpush.msra.mxu2 %v544_v33  ;;  %v892_v2 = vld [vmem:[%s1302_s4] ss:$0 sm:$0xff]  ;;  %v657_v8 = vld [vmem:[%s1307_s9 + $0x18] sm:$0xff]  ;;  %v656_v9 = vld [vmem:[%s1307_s9 + $0x10] sm:$0xff]  ;;  %p949_p4 = scmp.lt.s32.totalorder %s947_s0, %s943_s3 }
  0x31   : > { %524 = vmatpush.msra.mxu1 %v479_v26  ;;  %604 = vmatpush.msra.mxu3 %v584_v52  ;;  %v615_v7 = vld [vmem:[%s1305_s7] sm:$0xff]  ;;  %v655_v14 = vld [vmem:[%s1307_s9 + $0x8] sm:$0xff]  ;;  %p945_p1 = pnand %p944_p0, %p1109_p5 }
  0x32   : > { %505 = vmatpush.msra.mxu0 %v462_v28  ;;  %564 = vmatpush.msra.mxu2 %v543_v36  ;;  %v893_v10 = vld [vmem:[%s1304_s6] ss:$0 sm:$0xff]  ;;  %v693_v20 = vld [vmem:[%s1309_s11 + $0x8] sm:$0xff]  ;;  %p950_p7 = por %p949_p4, %p948_p3 }
  0x33   : > { %525 = vmatpush.msra.mxu1 %v478_v29  ;;  %605 = vmatpush.msra.mxu3 %v583_v53  ;;  %v654_v15 = vld [vmem:[%s1307_s9] sm:$0xff]  ;;  %p946_p2 = pneg %p945_p1 }
  0x34   : > { %506 = vmatpush.msra.mxu0 %v461_v31  ;;  %565 = vmatpush.msra.mxu2 %v542_v39  ;;  %v894_v16 = vld [vmem:[%s1306_s8] ss:$0 sm:$0xff] }
  0x35   : > { %526 = vmatpush.msra.mxu1 %v477_v32  ;;  %606 = vmatpush.msra.mxu3 %v582_v54  ;;  %v692_v21 = vld [vmem:[%s1309_s11] sm:$0xff]  ;;  %p951_p8 = pnand %p950_p7, %p946_p2 }
  0x36   : > { %507 = vmatpush.msra.mxu0 %v460_v34  ;;  %566 = vmatpush.msra.mxu2 %v541_v44  ;;  %v895_v23 = vld [vmem:[%s1308_s10] ss:$0 sm:$0xff] }
  0x37   : > { %527 = vmatpush.msra.mxu1 %v476_v35  ;;  %607 = vmatpush.msra.mxu3 %v581_v61  ;;  %v896_v28 = vld [vmem:[%s1310_s12] ss:$0 sm:$0xff] }
  0x38   : > { %508 = vmatpush.msra.mxu0 %v459_v37  ;;  %567 = vmatpush.msra.mxu2 %v540_v45 }
  0x39   : > { %528 = vmatpush.msra.mxu1 %v475_v38  ;;  %608 = vmatpush.msra.mxu3 %v580_v62 }
  0x3a   : > { %509 = vmatpush.msra.mxu0 %v458_v40  ;;  %568 = vmatpush.msra.mxu2 %v539_v46 }
  0x3b   : > { %529 = vmatpush.msra.mxu1 %v474_v41  ;;  %510 = vmatmul.f32.vlgmr.msra.gmra.mxu0 %v456_v42 }
  0x3c   : > { %530 = vmatmul.f32.vlgmr.msra.gmra.mxu1 %v457_v43  ;;  %569 = vmatpush.msra.mxu2 %v538_v47 }
  0x3d   : > { %609 = vmatpush.msra.mxu3 %v579_v63  ;;  %716 = vmatpush.msrb.mxu0 %v693_v20 }
  0x3e   : > { %570 = vmatpush.msra.mxu2 %v537_v48 }
  0x3f   : > { %639 = vmatpush.msrb.mxu3 %v618_v0  ;;  %717 = vmatpush.msrb.mxu0 %v692_v21 }
  0x40   : > { %571 = vmatpush.msra.mxu2 %v536_v49 }
  0x41   : > { %640 = vmatpush.msrb.mxu3 %v617_v1 }
  0x43   : > { %641 = vmatpush.msrb.mxu3 %v616_v6 }
  0x45   : > { %642 = vmatpush.msrb.mxu3 %v615_v7 }
  0xb8   : > { %v511_v56 = vpop.f32.mrf.mxu0 }
  0xb9   : > { %v531_v57 = vpop.f32.mrf.mxu1  ;;  %v512_v58 = vadd.f32 %v891_v55, %v511_v56 }
  0xbb   : > { %v532_v59 = vadd.f32 %v531_v57, %v512_v58 }
  0xbd   : > { %534 = vst [vmem:[%s1203_s1] sm:$0xff] %v532_v59  ;;  %v535_v60 = vmax.f32 %v532_v59, 0.0 }
  0xbf   : > { %572 = vmatmul.f32.vlgmr.msra.gmra.mxu2 %v535_v60 }
 0x142   : > { %v573_v3 = vpop.f32.mrf.mxu2 }
 0x143   : > { %v574_v4 = vadd.f32 %v892_v2, %v573_v3 }
 0x145   : > { %v578_v5 = vmax.f32 %v574_v4, 0.0  ;;  %577 = vst.msk [vmem:[%s1203_s1 + $0x8] sm:$0xff] %vm576_vm0, %v574_v4 }
 0x147   : > { %825 = vmatmul.msk.f32.vlgmr.msra.gmra.mxu3 %vm576_vm0, %v578_v5 }
 0x148   : > { %677 = vmatpush.msra.mxu3 %v657_v8 }
 0x14a   : > { %678 = vmatpush.msra.mxu3 %v656_v9 }
 0x14c   : > { %679 = vmatpush.msra.mxu3 %v655_v14 }
 0x14e   : > { %680 = vmatpush.msra.mxu3 %v654_v15 }
 0x1ca   : > { %v611_v11 = vpop.f32.mrf.mxu3 }
 0x1cb   : > { %v612_v12 = vadd.f32 %v893_v10, %v611_v11 }
 0x1cd   : > { %v614_v13 = vmax.f32 %v612_v12, 0.0 }
 0x1cf   : > { %826 = vmatmul.msk.f32.vlgmr.msrb.gmra.mxu3 %vm623_vm1, %v614_v13 }
 0x252   : > { %v644_v17 = vpop.f32.mrf.mxu3 }
 0x253   : > { %v645_v18 = vadd.f32 %v894_v16, %v644_v17 }
 0x255   : > { %v653_v19 = vmax.f32 %v645_v18, 0.0  ;;  %648 = vrot.lane.b32.xlu0 %v645_v18, %s998_s30  ;;  %s1000_s30 = smov 112  }
 0x257   : > { %827 = vmatmul.msk.f32.vlgmr.msra.gmra.mxu3 %vm623_vm1, %v653_v19 }
 0x2c7   : > { %v649_v22 = vpop.permute.xlu0 %648 }
 0x2c8   : > { %652 = vst.msk [vmem:[%s1203_s1 + $0x8] sm:$0xff] %vm651_vm2, %v649_v22 }
 0x2da   : > { %v682_v24 = vpop.f32.mrf.mxu3 }
 0x2db   : > { %v683_v25 = vadd.f32 %v895_v23, %v682_v24 }
 0x2dd   : > { %v691_v26 = vmax.f32 %v683_v25, 0.0  ;;  %686 = vrot.lane.b32.xlu0 %v683_v25, %s999_s2  ;;  %s1323_s2 = sand.u32 1, %s985_s26  }
 0x2de   : > { %s729_s23 = scalar_lea.sflag [#allocation4], %s1323_s2 }
 0x2df   : > { %828 = vmatmul.msk.f32.vlgmr.msrb.gmra.mxu0 %vm698_vm3, %v691_v26 }
 0x34f   : > { %v687_v27 = vpop.permute.xlu0 %686 }
 0x350   : > { %690 = vst.msk [vmem:[%s1203_s1 + $0x8] sm:$0xff] %vm689_vm4, %v687_v27 }
 0x35c   : > { %v719_v29 = vpop.f32.mrf.mxu0 }
 0x35d   : > { %v720_v30 = vadd.f32 %v896_v28, %v719_v29 }
 0x35f   : > { %723 = vrot.lane.b32.xlu1 %v720_v30, %s1000_s30 }
 0x3d1   : > { %v724_v31 = vpop.permute.xlu1 %723 }
 0x3d2   : > { %727 = vst.msk [vmem:[%s1203_s1 + $0x8] sm:$0xff] %vm726_vm5, %v724_v31 }
 0x3d3   : > { %954 = shalt.err (!%p951_p8)
}
 0x3d4   : > { %840 = dma.vmem_to_hbm [thread:$0]  (%p1109_p5), %s743_s22, 256, %s745_s15, %s729_s23  }
 0x3d5 PF: > { %p852_p9 = scmp.ge.s32.totalorder %s993_s28, 2  ;;  %s756_s1 = sand.u32 1, %s981_s25  }
 0x3d6   : > { %s757_s20 = scalar_lea.sflag [#allocation4], %s756_s1 }
 0x3d7   : > { %p847_p10 = pnand %p852_p9, %p1113_p6 }
 0x3d9   : > { %p848_p11 = pneg %p847_p10 }
 0x3db   : > { %976 = dma.done.wait (%p848_p11), %s757_s20, 256  }
 0x3dc   : > { %978 = vsyncadd (%p848_p11), %s757_s20, 4294967040  ;;  %p24_p12 = scmp.ge.s32.totalorder %s1096_s14, 4   ;;  %s1324_s25 = smov %s985_s26 }
 0x3dd   : > { %s1325_s26 = smov %s989_s27  ;;  %s1326_s27 = smov %s1107_s17 }
 0x3de   : > { %s1327_s28 = smov %s1096_s14  ;;  %26 = sbr.rel (!%p24_p12) target bundleno = 9 (0x9), region = 112 }
 0x3e3   :  { %763 = vsyncpa [#allocation3], 1 }
 0x3e4   :  { %765 = vsyncpa [#allocation3 + $0x1], 1 }
 0x3e5   :  { %766 = vsyncpa [#allocation4], 1 }
 0x3e6   :  { %768 = vsyncpa [#allocation4 + $0x1], 1 }

// kernel: tpu_custom_call.1
= control target key start
LH: loop header
LB: loop body
LE: loop exit
PB: predicated region body
PF: predicated region fallthrough
CT: control target
= control target key end

     0   :  { %s1298_s0 = inlined_call_operand.vmem [shape: f32[16,256], index: 0, kind: input, shape index: {}]   ;;  %s1299_s1 = inlined_call_operand.hbm [shape: f32[256,128], index: 1, kind: input, shape index: {}]   ;;  %s1300_s2 = inlined_call_operand.vmem [shape: f32[1,128], index: 2, kind: input, shape index: {}]   ;;  %s1301_s3 = inlined_call_operand.vmem [shape: f32[128,64], index: 3, kind: input, shape index: {}]   ;;  %s1302_s4 = inlined_call_operand.vmem [shape: f32[1,64], index: 4, kind: input, shape index: {}]   ;;  %s1303_s5 = inlined_call_operand.vmem [shape: f32[64,32], index: 5, kind: input, shape index: {}]   ;;  %s1304_s6 = inlined_call_operand.vmem [shape: f32[1,32], index: 6, kind: input, shape index: {}]   ;;  %s1305_s7 = inlined_call_operand.vmem [shape: f32[32,32], index: 7, kind: input, shape index: {}]   ;;  %s1306_s8 = inlined_call_operand.vmem [shape: f32[1,32], index: 8, kind: input, shape index: {}]   ;;  %s1307_s9 = inlined_call_operand.vmem [shape: f32[32,16], index: 9, kind: input, shape index: {}]   ;;  %s1308_s10 = inlined_call_operand.vmem [shape: f32[1,16], index: 10, kind: input, shape index: {}]   ;;  %s1309_s11 = inlined_call_operand.vmem [shape: f32[16,2], index: 11, kind: input, shape index: {}]   ;;  %s1310_s12 = inlined_call_operand.vmem [shape: f32[1,2], index: 12, kind: input, shape index: {}]   ;;  %s1311_s13 = inlined_call_operand.hbm [shape: f32[16,256], index: 13, kind: output, shape index: {}]  }
   0x1   :  { %1313 = sst [smem:[#allocation8_spill]] %s1298_s0 }
   0x2   :  { %1314 = sst [smem:[#allocation9_spill]] %s1299_s1 }
   0x3   :  { %1315 = sst [smem:[#allocation10_spill]] %s1300_s2 }
   0x4   :  { %1316 = sst [smem:[#allocation11_spill]] %s1301_s3 }
   0x5   :  { %18 = vsyncpa [#allocation3], 0 }
   0x6   :  { %19 = vsyncpa [#allocation4], 0 }
   0x7   :  { %21 = vsyncpa [#allocation4 + $0x1], 0  ;;  %s1071_s25 = smov 0   ;;  %s1073_s26 = smov 0  }
   0x8   :  { %s1075_s27 = smov 0   ;;  %s1077_s28 = smov 0  }
   0x9 LB: > { %s1092_s29 = sadd.s32 4294967295, %s993_s28   ;;  %s816_s30 = sadd.s32 4294967294, %s993_s28   ;;  %s993_s28 = sphi %s1077_s28, %s1327_s28   ;;  %s989_s27 = sphi %s1075_s27, %s1326_s27   ;;  %s985_s26 = sphi %s1073_s26, %s1325_s26   ;;  %s981_s25 = sphi %s1071_s25, %s1324_s25  }
   0xa   : > { %s1096_s14 = sadd.s32 1, %s993_s28   ;;  %s312_s15 = sadd.s32 1, %s989_s27 }
   0xb   : > { %s309_s16 = ssub.s32 %s993_s28, %s1096_s14  ;;  %p322_p0 = scmp.ne.s32.totalorder %s989_s27, %s985_s26 }
   0xc   : > { %p310_p1 = scmp.eq.s32.totalorder %s309_s16, 0  ;;  %p323_p2 = scmp.eq.s32.totalorder %s1092_s29, 1 }
   0xd   : > { %p328_p3 = scmp.ne.s32.totalorder %s985_s26, %s981_s25  ;;  %p329_p4 = scmp.eq.s32.totalorder %s816_s30, 1 }
   0xe   : > { %s1107_s17 = scalar_select %p310_p1, %s989_s27, %s312_s15  }
   0xf   : > { %p1109_p5 = por %p323_p2, %p322_p0  ;;  %p1113_p6 = por %p329_p4, %p328_p3 }
  0x10   : > { %p817_p7 = scmp.ge.s32.totalorder %s993_s28, 1  ;;  %p336_p8 = scmp.lt.s32.totalorder %s993_s28, 3 }
  0x11   : > { %p850_p9 = scmp.eq.s32.totalorder %s1092_s29, 0  ;;  %s1319_s1 = sld [smem:[#allocation9_spill]] }
  0x12   : > { %p337_p10 = pnand %p817_p7, %p336_p8  ;;  %s995_s23 = smov [#allocation2]  }
  0x13   : > { %s349_s24 = sshll.u32 %s995_s23, 4  ;;  %s996_s30 = smov 128   ;;  %s350_s24 = int_to_ptr.vmem [resolvable:$true] %s349_s24 }
  0x14   : > { %p842_p11 = pneg %p337_p10  ;;  %s997_s15 = smov 8  }
  0x15   : > { %406 = sbr.rel (%p337_p10) target bundleno = 981 (0x3d5), region = 72 }
  0x16   : > { %p843_p12 = pnand %p850_p9, %p842_p11 }
  0x17   : > { %s347_s22 = sshll.u32 %s1319_s1, 4  ;;  %s348_s22 = int_to_ptr.hbm [resolvable:$true] %s347_s22 }
  0x18   : > { %845 = dma.hbm_to_vmem [thread:$0]  (!%p843_p12), %s348_s22, 4096, %s350_s24, [#allocation3], %s996_s30, %s996_s30, %s997_s15  }
  0x1a   : > { %972 = dma.done.wait (%p850_p9), [#allocation3], 4096  }
  0x1b   : > { %974 = vsyncadd (%p850_p9), [#allocation3], 4294963200  ;;  %v473_v0 = vld [vmem:[#allocation2 + $0x78] sm:$0xff]  ;;  %v472_v1 = vld [vmem:[#allocation2 + $0x70] sm:$0xff]  ;;  %s1320_s3 = sld [smem:[#allocation11_spill]]  ;;  %p451_p13 = scmp.lt.s32.totalorder %s1092_s29, 1 }
  0x1c   : > { %v489_v2 = vld [vmem:[#allocation2 + $0xf8] sm:$0xff]  ;;  %494 = vmatpush.msra.mxu0 %v473_v0  ;;  %v488_v3 = vld [vmem:[#allocation2 + $0xf0] sm:$0xff]  ;;  %v471_v4 = vld [vmem:[#allocation2 + $0x68] sm:$0xff]  ;;  %s1321_s0 = sld [smem:[#allocation8_spill]]  ;;  %s1312_s23 = sand.u32 1, %s985_s26   ;;  %vm576_vm0 = vcmask 523264  }
  0x1d   : > { %514 = vmatpush.msra.mxu1 %v489_v2  ;;  %v487_v5 = vld [vmem:[#allocation2 + $0xe8] sm:$0xff]  ;;  %v470_v6 = vld [vmem:[#allocation2 + $0x60] sm:$0xff]  ;;  %v469_v8 = vld [vmem:[#allocation2 + $0x58] sm:$0xff]  ;;  %s452_s21 = scalar_select %p451_p13, %s1092_s29, 1  ;;  %vm623_vm1 = vcmask 261120   ;;  %vm651_vm2 = vcmask 785920  }
  0x1e   : > { %495 = vmatpush.msra.mxu0 %v472_v1  ;;  %v486_v7 = vld [vmem:[#allocation2 + $0xe0] sm:$0xff]  ;;  %v485_v9 = vld [vmem:[#allocation2 + $0xd8] sm:$0xff]  ;;  %v468_v10 = vld [vmem:[#allocation2 + $0x50] sm:$0xff]  ;;  %s1322_s2 = sld [smem:[#allocation10_spill]]  ;;  %s998_s30 = smov 64   ;;  %vm698_vm3 = vcmask 130048  }
  0x1f   : > { %515 = vmatpush.msra.mxu1 %v488_v3  ;;  %v484_v11 = vld [vmem:[#allocation2 + $0xd0] sm:$0xff]  ;;  %v467_v12 = vld [vmem:[#allocation2 + $0x48] sm:$0xff]  ;;  %v466_v16 = vld [vmem:[#allocation2 + $0x40] sm:$0xff]  ;;  %s834_s15 = sshll.u32 %s452_s21, 4  ;;  %vm689_vm4 = vcmask 917248   ;;  %vm726_vm5 = vcmask 933760  }
  0x20   : > { %496 = vmatpush.msra.mxu0 %v471_v4  ;;  %v483_v13 = vld [vmem:[#allocation2 + $0xc8] sm:$0xff]  ;;  %v482_v17 = vld [vmem:[#allocation2 + $0xc0] sm:$0xff]  ;;  %v465_v19 = vld [vmem:[#allocation2 + $0x38] sm:$0xff] }
  0x21   : > { %516 = vmatpush.msra.mxu1 %v487_v5  ;;  %v551_v14 = vld [vmem:[%s1320_s3 + $0x78] sm:$0xff]  ;;  %v550_v15 = vld [vmem:[%s1320_s3 + $0x70] sm:$0xff]  ;;  %v549_v18 = vld [vmem:[%s1320_s3 + $0x68] sm:$0xff] }
  0x22   : > { %497 = vmatpush.msra.mxu0 %v470_v6  ;;  %556 = vmatpush.msra.mxu2 %v551_v14  ;;  %v464_v20 = vld [vmem:[#allocation2 + $0x30] sm:$0xff]  ;;  %v481_v21 = vld [vmem:[#allocation2 + $0xb8] sm:$0xff]  ;;  %v548_v23 = vld [vmem:[%s1320_s3 + $0x60] sm:$0xff]  ;;  %s455_s1 = scalar_lea.vmem %s1321_s0, %s834_s15  ;;  %s822_s0 = sshll.u32 %s1312_s23, 4 }
  0x23   : > { %517 = vmatpush.msra.mxu1 %v486_v7  ;;  %v480_v22 = vld [vmem:[#allocation2 + $0xb0] sm:$0xff]  ;;  %v547_v24 = vld [vmem:[%s1320_s3 + $0x58] sm:$0xff]  ;;  %v463_v25 = vld [vmem:[#allocation2 + $0x28] sm:$0xff] }
  0x24   : > { %498 = vmatpush.msra.mxu0 %v469_v8  ;;  %557 = vmatpush.msra.mxu2 %v550_v15  ;;  %v479_v26 = vld [vmem:[#allocation2 + $0xa8] sm:$0xff]  ;;  %v546_v27 = vld [vmem:[%s1320_s3 + $0x50] sm:$0xff]  ;;  %v462_v28 = vld [vmem:[#allocation2 + $0x20] sm:$0xff] }
  0x25   : > { %518 = vmatpush.msra.mxu1 %v485_v9  ;;  %v478_v29 = vld [vmem:[#allocation2 + $0xa0] sm:$0xff]  ;;  %v545_v30 = vld [vmem:[%s1320_s3 + $0x48] sm:$0xff]  ;;  %v461_v31 = vld [vmem:[#allocation2 + $0x18] sm:$0xff] }
  0x26   : > { %499 = vmatpush.msra.mxu0 %v468_v10  ;;  %558 = vmatpush.msra.mxu2 %v549_v18  ;;  %v477_v32 = vld [vmem:[#allocation2 + $0x98] sm:$0xff]  ;;  %v544_v33 = vld [vmem:[%s1320_s3 + $0x40] sm:$0xff]  ;;  %v460_v34 = vld [vmem:[#allocation2 + $0x10] sm:$0xff] }
  0x27   : > { %519 = vmatpush.msra.mxu1 %v484_v11  ;;  %v476_v35 = vld [vmem:[#allocation2 + $0x90] sm:$0xff]  ;;  %v543_v36 = vld [vmem:[%s1320_s3 + $0x38] sm:$0xff]  ;;  %v459_v37 = vld [vmem:[#allocation2 + $0x8] sm:$0xff] }
  0x28   : > { %500 = vmatpush.msra.mxu0 %v467_v12  ;;  %559 = vmatpush.msra.mxu2 %v548_v23  ;;  %v475_v38 = vld [vmem:[#allocation2 + $0x88] sm:$0xff]  ;;  %v542_v39 = vld [vmem:[%s1320_s3 + $0x30] sm:$0xff]  ;;  %v458_v40 = vld [vmem:[#allocation2] sm:$0xff] }
  0x29   : > { %520 = vmatpush.msra.mxu1 %v483_v13  ;;  %v474_v41 = vld [vmem:[#allocation2 + $0x80] sm:$0xff]  ;;  %v457_v43 = vld [vmem:[%s455_s1 + $0x8] sm:$0xff]  ;;  %v539_v46 = vld [vmem:[%s1320_s3 + $0x18] sm:$0xff] }
  0x2a   : > { %501 = vmatpush.msra.mxu0 %v466_v16  ;;  %560 = vmatpush.msra.mxu2 %v547_v24  ;;  %v456_v42 = vld [vmem:[%s455_s1] sm:$0xff]  ;;  %v541_v44 = vld [vmem:[%s1320_s3 + $0x28] sm:$0xff]  ;;  %v538_v47 = vld [vmem:[%s1320_s3 + $0x10] sm:$0xff]  ;;  %s1203_s1 = scalar_lea.vmem [#allocation5], %s822_s0  ;;  %s835_s0 = sshll.u32 %s1092_s29, 4 }
  0x2b   : > { %521 = vmatpush.msra.mxu1 %v482_v17  ;;  %v540_v45 = vld [vmem:[%s1320_s3 + $0x20] sm:$0xff]  ;;  %v537_v48 = vld [vmem:[%s1320_s3 + $0x8] sm:$0xff]  ;;  %v586_v50 = vld [vmem:[%s1303_s5 + $0x38] sm:$0xff]  ;;  %s740_s20 = scalar_lea.hbm %s1311_s13, %s835_s0  ;;  %s742_s22 = sshll.u32 %s1203_s1, 4  ;;  %s743_s22 = int_to_ptr.vmem [resolvable:$true] %s742_s22 }
  0x2c   : > { %502 = vmatpush.msra.mxu0 %v465_v19  ;;  %561 = vmatpush.msra.mxu2 %v546_v27  ;;  %v536_v49 = vld [vmem:[%s1320_s3] sm:$0xff]  ;;  %v585_v51 = vld [vmem:[%s1303_s5 + $0x30] sm:$0xff]  ;;  %v584_v52 = vld [vmem:[%s1303_s5 + $0x28] sm:$0xff]  ;;  %s744_s15 = sshll.u32 %s740_s20, 4  ;;  %s947_s0 = scalar_lea.hbm %s1311_s13, 32  ;;  %s745_s15 = int_to_ptr.hbm [resolvable:$true] %s744_s15 }
  0x2d   : > { %522 = vmatpush.msra.mxu1 %v481_v21  ;;  %602 = vmatpush.msra.mxu3 %v586_v50  ;;  %v583_v53 = vld [vmem:[%s1303_s5 + $0x20] sm:$0xff]  ;;  %v582_v54 = vld [vmem:[%s1303_s5 + $0x18] sm:$0xff]  ;;  %v581_v61 = vld [vmem:[%s1303_s5 + $0x10] sm:$0xff]  ;;  %s941_s24 = sshra.s32 %s745_s15, 4  ;;  %s942_s24 = int_to_ptr.hbm [resolvable:$true] %s941_s24 }
  0x2e   : > { %503 = vmatpush.msra.mxu0 %v464_v20  ;;  %562 = vmatpush.msra.mxu2 %v545_v30  ;;  %v891_v55 = vld [vmem:[%s1322_s2] ss:$0 sm:$0xff]  ;;  %v580_v62 = vld [vmem:[%s1303_s5 + $0x8] sm:$0xff]  ;;  %v618_v0 = vld [vmem:[%s1305_s7 + $0x18] sm:$0xff]  ;;  %s999_s2 = smov 96   ;;  %s943_s3 = scalar_lea.hbm %s942_s24, 16 }
  0x2f   : > { %523 = vmatpush.msra.mxu1 %v480_v22  ;;  %603 = vmatpush.msra.mxu3 %v585_v51  ;;  %v579_v63 = vld [vmem:[%s1303_s5] sm:$0xff]  ;;  %v617_v1 = vld [vmem:[%s1305_s7 + $0x10] sm:$0xff]  ;;  %v616_v6 = vld [vmem:[%s1305_s7 + $0x8] sm:$0xff]  ;;  %p944_p0 = scmp.ne.s32.totalorder %s942_s24, %s943_s3  ;;  %p948_p3 = scmp.lt.s32.totalorder %s942_s24, %s1311_s13 }
  0x30   : > { %504 = vmatpush.msra.mxu0 %v463_v25  ;;  %563 = vmatpush.msra.mxu2 %v544_v33  ;;  %v892_v2 = vld [vmem:[%s1302_s4] ss:$0 sm:$0xff]  ;;  %v657_v8 = vld [vmem:[%s1307_s9 + $0x18] sm:$0xff]  ;;  %v656_v9 = vld [vmem:[%s1307_s9 + $0x10] sm:$0xff]  ;;  %p949_p4 = scmp.lt.s32.totalorder %s947_s0, %s943_s3 }
  0x31   : > { %524 = vmatpush.msra.mxu1 %v479_v26  ;;  %604 = vmatpush.msra.mxu3 %v584_v52  ;;  %v615_v7 = vld [vmem:[%s1305_s7] sm:$0xff]  ;;  %v655_v14 = vld [vmem:[%s1307_s9 + $0x8] sm:$0xff]  ;;  %p945_p1 = pnand %p944_p0, %p1109_p5 }
  0x32   : > { %505 = vmatpush.msra.mxu0 %v462_v28  ;;  %564 = vmatpush.msra.mxu2 %v543_v36  ;;  %v893_v10 = vld [vmem:[%s1304_s6] ss:$0 sm:$0xff]  ;;  %v693_v20 = vld [vmem:[%s1309_s11 + $0x8] sm:$0xff]  ;;  %p950_p7 = por %p949_p4, %p948_p3 }
  0x33   : > { %525 = vmatpush.msra.mxu1 %v478_v29  ;;  %605 = vmatpush.msra.mxu3 %v583_v53  ;;  %v654_v15 = vld [vmem:[%s1307_s9] sm:$0xff]  ;;  %p946_p2 = pneg %p945_p1 }
  0x34   : > { %506 = vmatpush.msra.mxu0 %v461_v31  ;;  %565 = vmatpush.msra.mxu2 %v542_v39  ;;  %v894_v16 = vld [vmem:[%s1306_s8] ss:$0 sm:$0xff] }
  0x35   : > { %526 = vmatpush.msra.mxu1 %v477_v32  ;;  %606 = vmatpush.msra.mxu3 %v582_v54  ;;  %v692_v21 = vld [vmem:[%s1309_s11] sm:$0xff]  ;;  %p951_p8 = pnand %p950_p7, %p946_p2 }
  0x36   : > { %507 = vmatpush.msra.mxu0 %v460_v34  ;;  %566 = vmatpush.msra.mxu2 %v541_v44  ;;  %v895_v23 = vld [vmem:[%s1308_s10] ss:$0 sm:$0xff] }
  0x37   : > { %527 = vmatpush.msra.mxu1 %v476_v35  ;;  %607 = vmatpush.msra.mxu3 %v581_v61  ;;  %v896_v28 = vld [vmem:[%s1310_s12] ss:$0 sm:$0xff] }
  0x38   : > { %508 = vmatpush.msra.mxu0 %v459_v37  ;;  %567 = vmatpush.msra.mxu2 %v540_v45 }
  0x39   : > { %528 = vmatpush.msra.mxu1 %v475_v38  ;;  %608 = vmatpush.msra.mxu3 %v580_v62 }
  0x3a   : > { %509 = vmatpush.msra.mxu0 %v458_v40  ;;  %568 = vmatpush.msra.mxu2 %v539_v46 }
  0x3b   : > { %529 = vmatpush.msra.mxu1 %v474_v41  ;;  %510 = vmatmul.f32.vlgmr.msra.gmra.mxu0 %v456_v42 }
  0x3c   : > { %530 = vmatmul.f32.vlgmr.msra.gmra.mxu1 %v457_v43  ;;  %569 = vmatpush.msra.mxu2 %v538_v47 }
  0x3d   : > { %609 = vmatpush.msra.mxu3 %v579_v63  ;;  %716 = vmatpush.msrb.mxu0 %v693_v20 }
  0x3e   : > { %570 = vmatpush.msra.mxu2 %v537_v48 }
  0x3f   : > { %639 = vmatpush.msrb.mxu3 %v618_v0  ;;  %717 = vmatpush.msrb.mxu0 %v692_v21 }
  0x40   : > { %571 = vmatpush.msra.mxu2 %v536_v49 }
  0x41   : > { %640 = vmatpush.msrb.mxu3 %v617_v1 }
  0x43   : > { %641 = vmatpush.msrb.mxu3 %v616_v6 }
  0x45   : > { %642 = vmatpush.msrb.mxu3 %v615_v7 }
  0xb8   : > { %v511_v56 = vpop.f32.mrf.mxu0 }
  0xb9   : > { %v531_v57 = vpop.f32.mrf.mxu1  ;;  %v512_v58 = vadd.f32 %v891_v55, %v511_v56 }
  0xbb   : > { %v532_v59 = vadd.f32 %v531_v57, %v512_v58 }
  0xbd   : > { %534 = vst [vmem:[%s1203_s1] sm:$0xff] %v532_v59  ;;  %v535_v60 = vmax.f32 %v532_v59, 0.0 }
  0xbf   : > { %572 = vmatmul.f32.vlgmr.msra.gmra.mxu2 %v535_v60 }
 0x142   : > { %v573_v3 = vpop.f32.mrf.mxu2 }
 0x143   : > { %v574_v4 = vadd.f32 %v892_v2, %v573_v3 }
 0x145   : > { %v578_v5 = vmax.f32 %v574_v4, 0.0  ;;  %577 = vst.msk [vmem:[%s1203_s1 + $0x8] sm:$0xff] %vm576_vm0, %v574_v4 }
 0x147   : > { %825 = vmatmul.msk.f32.vlgmr.msra.gmra.mxu3 %vm576_vm0, %v578_v5 }
 0x148   : > { %677 = vmatpush.msra.mxu3 %v657_v8 }
 0x14a   : > { %678 = vmatpush.msra.mxu3 %v656_v9 }
 0x14c   : > { %679 = vmatpush.msra.mxu3 %v655_v14 }
 0x14e   : > { %680 = vmatpush.msra.mxu3 %v654_v15 }
 0x1ca   : > { %v611_v11 = vpop.f32.mrf.mxu3 }
 0x1cb   : > { %v612_v12 = vadd.f32 %v893_v10, %v611_v11 }
 0x1cd   : > { %v614_v13 = vmax.f32 %v612_v12, 0.0 }
 0x1cf   : > { %826 = vmatmul.msk.f32.vlgmr.msrb.gmra.mxu3 %vm623_vm1, %v614_v13 }
 0x252   : > { %v644_v17 = vpop.f32.mrf.mxu3 }
 0x253   : > { %v645_v18 = vadd.f32 %v894_v16, %v644_v17 }
 0x255   : > { %v653_v19 = vmax.f32 %v645_v18, 0.0  ;;  %648 = vrot.lane.b32.xlu0 %v645_v18, %s998_s30  ;;  %s1000_s30 = smov 112  }
 0x257   : > { %827 = vmatmul.msk.f32.vlgmr.msra.gmra.mxu3 %vm623_vm1, %v653_v19 }
 0x2c7   : > { %v649_v22 = vpop.permute.xlu0 %648 }
 0x2c8   : > { %652 = vst.msk [vmem:[%s1203_s1 + $0x8] sm:$0xff] %vm651_vm2, %v649_v22 }
 0x2da   : > { %v682_v24 = vpop.f32.mrf.mxu3 }
 0x2db   : > { %v683_v25 = vadd.f32 %v895_v23, %v682_v24 }
 0x2dd   : > { %v691_v26 = vmax.f32 %v683_v25, 0.0  ;;  %686 = vrot.lane.b32.xlu0 %v683_v25, %s999_s2  ;;  %s1323_s2 = sand.u32 1, %s985_s26  }
 0x2de   : > { %s729_s23 = scalar_lea.sflag [#allocation4], %s1323_s2 }
 0x2df   : > { %828 = vmatmul.msk.f32.vlgmr.msrb.gmra.mxu0 %vm698_vm3, %v691_v26 }
 0x34f   : > { %v687_v27 = vpop.permute.xlu0 %686 }
 0x350   : > { %690 = vst.msk [vmem:[%s1203_s1 + $0x8] sm:$0xff] %vm689_vm4, %v687_v27 }
 0x35c   : > { %v719_v29 = vpop.f32.mrf.mxu0 }
 0x35d   : > { %v720_v30 = vadd.f32 %v896_v28, %v719_v29 }
 0x35f   : > { %723 = vrot.lane.b32.xlu1 %v720_v30, %s1000_s30 }
 0x3d1   : > { %v724_v31 = vpop.permute.xlu1 %723 }
 0x3d2   : > { %727 = vst.msk [vmem:[%s1203_s1 + $0x8] sm:$0xff] %vm726_vm5, %v724_v31 }
 0x3d3   : > { %954 = shalt.err (!%p951_p8)
}
 0x3d4   : > { %840 = dma.vmem_to_hbm [thread:$0]  (%p1109_p5), %s743_s22, 256, %s745_s15, %s729_s23  }
 0x3d5 PF: > { %p852_p9 = scmp.ge.s32.totalorder %s993_s28, 2  ;;  %s756_s1 = sand.u32 1, %s981_s25  }
 0x3d6   : > { %s757_s20 = scalar_lea.sflag [#allocation4], %s756_s1 }
 0x3d7   : > { %p847_p10 = pnand %p852_p9, %p1113_p6 }
 0x3d9   : > { %p848_p11 = pneg %p847_p10 }
 0x3db   : > { %976 = dma.done.wait (%p848_p11), %s757_s20, 256  }
 0x3dc   : > { %978 = vsyncadd (%p848_p11), %s757_s20, 4294967040  ;;  %p24_p12 = scmp.ge.s32.totalorder %s1096_s14, 4   ;;  %s1324_s25 = smov %s985_s26 }
 0x3dd   : > { %s1325_s26 = smov %s989_s27  ;;  %s1326_s27 = smov %s1107_s17 }
 0x3de   : > { %s1327_s28 = smov %s1096_s14  ;;  %26 = sbr.rel (!%p24_p12) target bundleno = 9 (0x9), region = 112 }
 0x3e3   :  { %763 = vsyncpa [#allocation3], 1 }
 0x3e4   :  { %765 = vsyncpa [#allocation3 + $0x1], 1 }
 0x3e5   :  { %766 = vsyncpa [#allocation4], 1 }
 0x3e6   :  { %768 = vsyncpa [#allocation4 + $0x1], 1 }

</bundles_post_ra>
